<compile_context>
chip_gen: v7x
topology: tpu7x:2x2x1
jax: 0.10.0
libtpu: 0.0.40
codegen_flags: <defaults>
</compile_context>

<pallas_src>
import jax
import jax.numpy as jnp
from jax import lax
from jax.experimental import pallas as pl
from jax.experimental.pallas import tpu as pltpu


def focus_kernel(a_ref, halo_ref, w_ref, bias_ref, o_ref):
    # a_ref:    (1, TH, Wp, C4)   main TH rows of the padded space-to-depth input
    # halo_ref: (1, 2,  Wp, C4)   2-row bottom halo (window rows TH, TH+1)
    # w_ref:    (9*C4, Cout)      im2col conv weight (BatchNorm scale pre-folded)
    # bias_ref: (1, Cout)         folded conv bias + BatchNorm shift (f32)
    # o_ref:    (1, TH, Wo, Cout) output tile (NHWC, exactly Cout channels)
    TH = o_ref.shape[1]
    Wo = o_ref.shape[2]
    Cout = o_ref.shape[3]
    C4 = a_ref.shape[3]

    def tap(kh, kw):
        # Window rows kh .. kh+TH-1, cols kw .. kw+Wo-1; rows 0..TH-1 live in
        # a_ref, rows TH..TH+1 in halo_ref.  All slices are static; the only
        # stitching is a cheap major-dim concat for kh > 0.
        parts = []
        if TH - kh > 0:
            parts.append(a_ref[0, kh:TH, kw:kw + Wo, :])
        if kh > 0:
            parts.append(halo_ref[0, 0:kh, kw:kw + Wo, :])
        return parts[0] if len(parts) == 1 else jnp.concatenate(parts, axis=0)

    # im2col: 9 statically shifted taps -> (TH*Wo, 9*C4) patch, then ONE MXU
    # matmul with K = 9*C4 and f32 accumulation.
    # TODO(synk): for very large tiles, chunk the M = TH*Wo dimension with a
    # fori_loop (or prefill a VMEM patch scratch) to bound this temporary; the
    # budget-based TH picker in the wrapper keeps it small enough for now.
    taps = [tap(kh, kw) for kh in range(3) for kw in range(3)]
    patch = jnp.concatenate(taps, axis=-1).reshape(TH * Wo, 9 * C4)

    y = jnp.dot(patch, w_ref[...], preferred_element_type=jnp.float32)
    y = y + bias_ref[...]              # conv bias + BatchNorm (eval) shift
    y = jnp.maximum(y, 0.1 * y)        # LeakyReLU(0.1)
    # Wo % 8 == 0 -> this reshape only splits the sublane dim (layout friendly).
    o_ref[0] = y.reshape(TH, Wo, Cout).astype(o_ref.dtype)


def _rup(x, m):
    return ((x + m - 1) // m) * m


def _sublane_tile(itemsize):
    return {4: 8, 2: 16, 1: 32}.get(itemsize, 8)


def _tiled_bytes(lead, sub, lane, dtype):
    it = jnp.dtype(dtype).itemsize
    return lead * _rup(max(sub, 1), _sublane_tile(it)) * _rup(max(lane, 1), 128) * it


def _vmem_step_bytes(TH, Wo, Wp, C4, Cout, compute_dtype, out_dtype):
    """Rough per-grid-step VMEM estimate (double-buffered blocks + temporaries)."""
    K = 9 * C4
    b = 0
    b += 2 * _tiled_bytes(TH, Wp, C4, compute_dtype)     # main input block x2 buffers
    b += 2 * _tiled_bytes(2, Wp, C4, compute_dtype)      # halo block        x2 buffers
    b += 2 * _tiled_bytes(1, K, Cout, compute_dtype)     # weight            x2 buffers
    b += 2 * _tiled_bytes(TH, Wo, Cout, out_dtype)       # output block      x2 buffers
    b += _tiled_bytes(1, TH * Wo, K, compute_dtype)      # im2col patch value
    b += _tiled_bytes(1, TH * Wo, Cout, jnp.float32)     # f32 matmul/epilogue value
    b += 2 * _tiled_bytes(TH, Wo, C4, compute_dtype)     # tap / concat temporaries
    return b


def _pick_tile_h(N, Ho, Wo, Wp, C4, Cout, compute_dtype, out_dtype, budget):
    cands = [t for t in range(Ho, 1, -1) if Ho % t == 0 and t % 2 == 0]
    if not cands:
        raise ValueError(f"Ho={Ho} must have an even divisor >= 2")
    # Keep >= 2 total grid steps when possible so both v7x TensorCores get work.
    pref = [t for t in cands if N * (Ho // t) >= 2] or cands
    for t in pref:
        if _vmem_step_bytes(t, Wo, Wp, C4, Cout, compute_dtype, out_dtype) <= budget:
            return t
    return pref[-1]


def focus_forward(x_nchw, conv_w, conv_b, bn_gamma, bn_beta, bn_mean, bn_var,
                  eps=1e-5, tile_h=None, compute_dtype=jnp.bfloat16,
                  out_dtype=None, vmem_budget_bytes=36 * 1024 * 1024):
    """Focus forward.  x_nchw: (N, Cin, H, W) -> (N, Cout, H//2, W//2)."""
    N, Cin, H, W = x_nchw.shape
    Cout = conv_w.shape[0]
    assert conv_w.shape == (Cout, 4 * Cin, 3, 3), conv_w.shape
    assert H % 2 == 0 and W % 2 == 0, "space-to-depth needs even H and W"
    C4 = 4 * Cin
    Ho, Wo = H // 2, W // 2
    Wp = Wo + 2
    assert Ho % 2 == 0, "row tiling needs even Ho"   # TODO(synk): odd Ho (1-row halo)
    assert Wo % 8 == 0, "Wo must be a multiple of 8 (layout-preserving reshapes)"
    if out_dtype is None:
        out_dtype = x_nchw.dtype

    if tile_h is None:
        tile_h = _pick_tile_h(N, Ho, Wo, Wp, C4, Cout, compute_dtype, out_dtype,
                              vmem_budget_bytes)
    TH = int(tile_h)
    assert Ho % TH == 0 and TH % 2 == 0, (Ho, TH)

    # --- host-side prep -------------------------------------------------------
    # Space-to-depth in NHWC; channel order (quadrant-major, then Cin) matches
    # torch.cat on NCHW exactly.  Conv padding=1 is pre-applied spatially.
    # TODO(synk): fuse space-to-depth / pad / cast into the kernel with strided
    # make_async_copy from the raw NCHW input (memory_space=pl.ANY) to remove
    # these extra HBM round trips; the op is HBM-bound.
    xh = jnp.transpose(x_nchw, (0, 2, 3, 1))
    xs = jnp.concatenate(
        [xh[:, ::2, ::2, :], xh[:, ::2, 1::2, :],
         xh[:, 1::2, ::2, :], xh[:, 1::2, 1::2, :]], axis=-1)   # (N, Ho, Wo, C4)
    xs = jnp.pad(xs, ((0, 0), (1, 1), (1, 1), (0, 0))).astype(compute_dtype)

    # im2col weight with the BatchNorm (eval-mode) scale folded in:
    # (Cout, C4, 3, 3) -> (kh, kw, c, o) -> (9*C4, Cout).
    # TODO(synk): PyTorch default is train-mode BN (batch stats); eval-mode
    # (running stats) is used here for a deterministic single-pass kernel.
    s = bn_gamma / jnp.sqrt(bn_var + eps)
    w = jnp.transpose(conv_w * s[:, None, None, None], (2, 3, 1, 0))
    w = w.reshape(9 * C4, Cout).astype(compute_dtype)
    bias = ((conv_b - bn_mean) * s + bn_beta).reshape(1, Cout).astype(jnp.float32)

    est = _vmem_step_bytes(TH, Wo, Wp, C4, Cout, compute_dtype, out_dtype)
    vmem_limit = int(min(max(est * 3 // 2 + (8 << 20), 32 << 20), 120 << 20))

    grid = (N, Ho // TH)
    out_nhwc = pl.pallas_call(
        focus_kernel,
        out_shape=jax.ShapeDtypeStruct((N, Ho, Wo, Cout), out_dtype),
        grid_spec=pltpu.PrefetchScalarGridSpec(
            num_scalar_prefetch=0,
            grid=grid,
            in_specs=[
                # main TH rows of the padded input for this tile
                pl.BlockSpec((1, TH, Wp, C4), lambda n, t: (n, t, 0, 0)),
                # 2-row bottom halo: the same array viewed in 2-row blocks
                pl.BlockSpec((1, 2, Wp, C4),
                             lambda n, t: (n, (t + 1) * (TH // 2), 0, 0)),
                pl.BlockSpec((9 * C4, Cout), lambda n, t: (0, 0)),
                pl.BlockSpec((1, Cout), lambda n, t: (0, 0)),
            ],
            out_specs=pl.BlockSpec((1, TH, Wo, Cout), lambda n, t: (n, t, 0, 0)),
        ),
        compiler_params=pltpu.CompilerParams(
            dimension_semantics=("parallel", "parallel"),
            vmem_limit_bytes=vmem_limit),
    )(xs, xs, w, bias)

    # Return NCHW to match the PyTorch module (small transpose on the narrow
    # Cout output).  TODO(synk): write NCHW directly from the kernel instead.
    return jnp.transpose(out_nhwc, (0, 3, 1, 2))


def focus_reference(x_nchw, conv_w, conv_b, bn_gamma, bn_beta, bn_mean, bn_var,
                    eps=1e-5):
    """Pure-JAX reference (lax.conv) for correctness checking."""
    xs = jnp.concatenate(
        [x_nchw[..., ::2, ::2], x_nchw[..., ::2, 1::2],
         x_nchw[..., 1::2, ::2], x_nchw[..., 1::2, 1::2]], axis=1)
    y = lax.conv_general_dilated(
        xs, conv_w, window_strides=(1, 1), padding=((1, 1), (1, 1)),
        dimension_numbers=("NCHW", "OIHW", "NCHW"))
    y = y + conv_b[None, :, None, None]
    s = bn_gamma / jnp.sqrt(bn_var + eps)
    y = (y - bn_mean[None, :, None, None]) * s[None, :, None, None] \
        + bn_beta[None, :, None, None]
    return jnp.where(y > 0, y, 0.1 * y)


if __name__ == "__main__":
    key = jax.random.PRNGKey(0)
    k_x, k_w, k_b, k_g, k_bt, k_m, k_v = jax.random.split(key, 7)

    N, Cin, H, W = 2, 4, 16, 16
    Cout = 8

    x = jax.random.normal(k_x, (N, Cin, H, W), jnp.float32)
    conv_w = jax.random.normal(k_w, (Cout, 4 * Cin, 3, 3), jnp.float32) * 0.1
    conv_b = jax.random.normal(k_b, (Cout,), jnp.float32) * 0.1
    bn_gamma = 1.0 + 0.1 * jax.random.normal(k_g, (Cout,), jnp.float32)
    bn_beta = 0.1 * jax.random.normal(k_bt, (Cout,), jnp.float32)
    bn_mean = 0.1 * jax.random.normal(k_m, (Cout,), jnp.float32)
    bn_var = 1.0 + 0.1 * jax.random.uniform(k_v, (Cout,), jnp.float32)

    ref = focus_reference(x, conv_w, conv_b, bn_gamma, bn_beta, bn_mean, bn_var)

    # f32 compute, explicit multi-row-tile (exercises the halo stitching).
    out_f32 = focus_forward(x, conv_w, conv_b, bn_gamma, bn_beta, bn_mean,
                            bn_var, tile_h=4, compute_dtype=jnp.float32)
    out_f32 = jax.block_until_ready(out_f32)
    assert out_f32.shape == (N, Cout, H // 2, W // 2)
    assert jnp.allclose(out_f32, ref, atol=2e-4, rtol=2e-4)

    # Default path: bf16 compute (recommended on v5e/v6e/v7x), auto tile pick.
    out_bf16 = focus_forward(x, conv_w, conv_b, bn_gamma, bn_beta, bn_mean,
                             bn_var)
    out_bf16 = jax.block_until_ready(out_bf16)
    assert out_bf16.shape == (N, Cout, H // 2, W // 2)
    assert jnp.allclose(out_bf16.astype(jnp.float32), ref, atol=5e-2, rtol=5e-2)

    print("KERNEL_OK")
</pallas_src>

<mosaic_0001>
module attributes {stable_mosaic.version = 11 : i64} {
  func.func @focus_kernel(%arg0: i32, %arg1: i32, %arg2: memref<1x4x10x16xf32, #tpu.memory_space<vmem>>, %arg3: memref<1x2x10x16xf32, #tpu.memory_space<vmem>>, %arg4: memref<144x8xf32, #tpu.memory_space<vmem>>, %arg5: memref<1x8xf32, #tpu.memory_space<vmem>>, %arg6: memref<1x4x8x8xf32, #tpu.memory_space<vmem>>) attributes {dimension_semantics = [#tpu.dimension_semantics<parallel>, #tpu.dimension_semantics<parallel>], iteration_bounds = array<i64: 2, 2>, scalar_prefetch = 0 : i64, scratch_operands = 0 : i64, tpu.core_type = #tpu.core_type<tc>, window_params = [{transform_indices = @transform_0, window_bounds = array<i64: 1, 4, 10, 16>}, {transform_indices = @transform_1, window_bounds = array<i64: 1, 2, 10, 16>}, {pipeline_mode = #tpu.pipeline_mode<synchronous>, transform_indices = @transform_2, window_bounds = array<i64: 144, 8>}, {pipeline_mode = #tpu.pipeline_mode<synchronous>, transform_indices = @transform_3, window_bounds = array<i64: 1, 8>}, {transform_indices = @transform_4, window_bounds = array<i64: 1, 4, 8, 8>}]} {
    %c0 = arith.constant 0 : index
    %c0_0 = arith.constant 0 : index
    %c0_1 = arith.constant 0 : index
    %c0_2 = arith.constant 0 : index
    %0 = vector.load %arg2[%c0, %c0_0, %c0_1, %c0_2] : memref<1x4x10x16xf32, #tpu.memory_space<vmem>>, vector<1x4x8x16xf32>
    %1 = vector.shape_cast %0 : vector<1x4x8x16xf32> to vector<4x8x16xf32>
    %c0_3 = arith.constant 0 : index
    %c0_4 = arith.constant 0 : index
    %c1 = arith.constant 1 : index
    %c0_5 = arith.constant 0 : index
    %2 = vector.load %arg2[%c0_3, %c0_4, %c1, %c0_5] : memref<1x4x10x16xf32, #tpu.memory_space<vmem>>, vector<1x4x8x16xf32>
    %3 = vector.shape_cast %2 : vector<1x4x8x16xf32> to vector<4x8x16xf32>
    %c0_6 = arith.constant 0 : index
    %c0_7 = arith.constant 0 : index
    %c2 = arith.constant 2 : index
    %c0_8 = arith.constant 0 : index
    %4 = vector.load %arg2[%c0_6, %c0_7, %c2, %c0_8] : memref<1x4x10x16xf32, #tpu.memory_space<vmem>>, vector<1x4x8x16xf32>
    %5 = vector.shape_cast %4 : vector<1x4x8x16xf32> to vector<4x8x16xf32>
    %c0_9 = arith.constant 0 : index
    %c1_10 = arith.constant 1 : index
    %c0_11 = arith.constant 0 : index
    %c0_12 = arith.constant 0 : index
    %6 = vector.load %arg2[%c0_9, %c1_10, %c0_11, %c0_12] : memref<1x4x10x16xf32, #tpu.memory_space<vmem>>, vector<1x3x8x16xf32>
    %7 = vector.shape_cast %6 : vector<1x3x8x16xf32> to vector<3x8x16xf32>
    %c0_13 = arith.constant 0 : index
    %c0_14 = arith.constant 0 : index
    %c0_15 = arith.constant 0 : index
    %c0_16 = arith.constant 0 : index
    %8 = vector.load %arg3[%c0_13, %c0_14, %c0_15, %c0_16] : memref<1x2x10x16xf32, #tpu.memory_space<vmem>>, vector<1x1x8x16xf32>
    %9 = vector.shape_cast %8 : vector<1x1x8x16xf32> to vector<1x8x16xf32>
    %10 = tpu.concatenate %7, %9 in 0 : vector<3x8x16xf32>, vector<1x8x16xf32> -> vector<4x8x16xf32>
    %c0_17 = arith.constant 0 : index
    %c1_18 = arith.constant 1 : index
    %c1_19 = arith.constant 1 : index
    %c0_20 = arith.constant 0 : index
    %11 = vector.load %arg2[%c0_17, %c1_18, %c1_19, %c0_20] : memref<1x4x10x16xf32, #tpu.memory_space<vmem>>, vector<1x3x8x16xf32>
    %12 = vector.shape_cast %11 : vector<1x3x8x16xf32> to vector<3x8x16xf32>
    %c0_21 = arith.constant 0 : index
    %c0_22 = arith.constant 0 : index
    %c1_23 = arith.constant 1 : index
    %c0_24 = arith.constant 0 : index
    %13 = vector.load %arg3[%c0_21, %c0_22, %c1_23, %c0_24] : memref<1x2x10x16xf32, #tpu.memory_space<vmem>>, vector<1x1x8x16xf32>
    %14 = vector.shape_cast %13 : vector<1x1x8x16xf32> to vector<1x8x16xf32>
    %15 = tpu.concatenate %12, %14 in 0 : vector<3x8x16xf32>, vector<1x8x16xf32> -> vector<4x8x16xf32>
    %c0_25 = arith.constant 0 : index
    %c1_26 = arith.constant 1 : index
    %c2_27 = arith.constant 2 : index
    %c0_28 = arith.constant 0 : index
    %16 = vector.load %arg2[%c0_25, %c1_26, %c2_27, %c0_28] : memref<1x4x10x16xf32, #tpu.memory_space<vmem>>, vector<1x3x8x16xf32>
    %17 = vector.shape_cast %16 : vector<1x3x8x16xf32> to vector<3x8x16xf32>
    %c0_29 = arith.constant 0 : index
    %c0_30 = arith.constant 0 : index
    %c2_31 = arith.constant 2 : index
    %c0_32 = arith.constant 0 : index
    %18 = vector.load %arg3[%c0_29, %c0_30, %c2_31, %c0_32] : memref<1x2x10x16xf32, #tpu.memory_space<vmem>>, vector<1x1x8x16xf32>
    %19 = vector.shape_cast %18 : vector<1x1x8x16xf32> to vector<1x8x16xf32>
    %20 = tpu.concatenate %17, %19 in 0 : vector<3x8x16xf32>, vector<1x8x16xf32> -> vector<4x8x16xf32>
    %c0_33 = arith.constant 0 : index
    %c2_34 = arith.constant 2 : index
    %c0_35 = arith.constant 0 : index
    %c0_36 = arith.constant 0 : index
    %21 = vector.load %arg2[%c0_33, %c2_34, %c0_35, %c0_36] : memref<1x4x10x16xf32, #tpu.memory_space<vmem>>, vector<1x2x8x16xf32>
    %22 = vector.shape_cast %21 : vector<1x2x8x16xf32> to vector<2x8x16xf32>
    %c0_37 = arith.constant 0 : index
    %c0_38 = arith.constant 0 : index
    %c0_39 = arith.constant 0 : index
    %c0_40 = arith.constant 0 : index
    %23 = vector.load %arg3[%c0_37, %c0_38, %c0_39, %c0_40] : memref<1x2x10x16xf32, #tpu.memory_space<vmem>>, vector<1x2x8x16xf32>
    %24 = vector.shape_cast %23 : vector<1x2x8x16xf32> to vector<2x8x16xf32>
    %25 = tpu.concatenate %22, %24 in 0 : vector<2x8x16xf32>, vector<2x8x16xf32> -> vector<4x8x16xf32>
    %c0_41 = arith.constant 0 : index
    %c2_42 = arith.constant 2 : index
    %c1_43 = arith.constant 1 : index
    %c0_44 = arith.constant 0 : index
    %26 = vector.load %arg2[%c0_41, %c2_42, %c1_43, %c0_44] : memref<1x4x10x16xf32, #tpu.memory_space<vmem>>, vector<1x2x8x16xf32>
    %27 = vector.shape_cast %26 : vector<1x2x8x16xf32> to vector<2x8x16xf32>
    %c0_45 = arith.constant 0 : index
    %c0_46 = arith.constant 0 : index
    %c1_47 = arith.constant 1 : index
    %c0_48 = arith.constant 0 : index
    %28 = vector.load %arg3[%c0_45, %c0_46, %c1_47, %c0_48] : memref<1x2x10x16xf32, #tpu.memory_space<vmem>>, vector<1x2x8x16xf32>
    %29 = vector.shape_cast %28 : vector<1x2x8x16xf32> to vector<2x8x16xf32>
    %30 = tpu.concatenate %27, %29 in 0 : vector<2x8x16xf32>, vector<2x8x16xf32> -> vector<4x8x16xf32>
    %c0_49 = arith.constant 0 : index
    %c2_50 = arith.constant 2 : index
    %c2_51 = arith.constant 2 : index
    %c0_52 = arith.constant 0 : index
    %31 = vector.load %arg2[%c0_49, %c2_50, %c2_51, %c0_52] : memref<1x4x10x16xf32, #tpu.memory_space<vmem>>, vector<1x2x8x16xf32>
    %32 = vector.shape_cast %31 : vector<1x2x8x16xf32> to vector<2x8x16xf32>
    %c0_53 = arith.constant 0 : index
    %c0_54 = arith.constant 0 : index
    %c2_55 = arith.constant 2 : index
    %c0_56 = arith.constant 0 : index
    %33 = vector.load %arg3[%c0_53, %c0_54, %c2_55, %c0_56] : memref<1x2x10x16xf32, #tpu.memory_space<vmem>>, vector<1x2x8x16xf32>
    %34 = vector.shape_cast %33 : vector<1x2x8x16xf32> to vector<2x8x16xf32>
    %35 = tpu.concatenate %32, %34 in 0 : vector<2x8x16xf32>, vector<2x8x16xf32> -> vector<4x8x16xf32>
    %36 = tpu.concatenate %1, %3, %5, %10, %15, %20, %25, %30, %35 in 2 : vector<4x8x16xf32>, vector<4x8x16xf32>, vector<4x8x16xf32>, vector<4x8x16xf32>, vector<4x8x16xf32>, vector<4x8x16xf32>, vector<4x8x16xf32>, vector<4x8x16xf32>, vector<4x8x16xf32> -> vector<4x8x144xf32>
    %37 = vector.shape_cast %36 : vector<4x8x144xf32> to vector<32x144xf32>
    %c0_57 = arith.constant 0 : index
    %c0_58 = arith.constant 0 : index
    %38 = vector.load %arg4[%c0_57, %c0_58] : memref<144x8xf32, #tpu.memory_space<vmem>>, vector<144x8xf32>
    %cst = arith.constant dense<0.000000e+00> : vector<32x8xf32>
    %39 = tpu.matmul %37, %38, %cst {dimension_numbers = #tpu.dot_dimension_numbers<[1], [0], [0], [1], [0, 0, 1, 1], [], []>} : vector<32x144xf32>, vector<144x8xf32>, vector<32x8xf32> -> vector<32x8xf32>
    %c0_59 = arith.constant 0 : index
    %c0_60 = arith.constant 0 : index
    %40 = vector.load %arg5[%c0_59, %c0_60] : memref<1x8xf32, #tpu.memory_space<vmem>>, vector<1x8xf32>
    %41 = vector.broadcast %40 : vector<1x8xf32> to vector<32x8xf32>
    %42 = arith.addf %39, %41 : vector<32x8xf32>
    %cst_61 = arith.constant 1.000000e-01 : f32
    %43 = vector.broadcast %cst_61 : f32 to vector<32x8xf32>
    %44 = arith.mulf %43, %42 : vector<32x8xf32>
    %45 = arith.maximumf %42, %44 : vector<32x8xf32>
    %46 = vector.shape_cast %45 : vector<32x8xf32> to vector<4x8x8xf32>
    %c0_62 = arith.constant 0 : index
    %c0_63 = arith.constant 0 : index
    %c0_64 = arith.constant 0 : index
    %c0_65 = arith.constant 0 : index
    %47 = vector.load %arg6[%c0_62, %c0_63, %c0_64, %c0_65] : memref<1x4x8x8xf32, #tpu.memory_space<vmem>>, vector<1x4x8x8xf32>
    %48 = vector.shape_cast %47 : vector<1x4x8x8xf32> to vector<4x8x8xf32>
    %49 = vector.shape_cast %46 : vector<4x8x8xf32> to vector<1x4x8x8xf32>
    tpu.vector_store %arg6[%c0_62, %c0_63, %c0_64, %c0_65], %49 {strides = array<i32>} : memref<1x4x8x8xf32, #tpu.memory_space<vmem>>, vector<1x4x8x8xf32>,
    return
  }
  func.func @transform_0(%arg0: i32, %arg1: i32) -> (i32, i32, i32, i32) {
    %c0_i32 = arith.constant 0 : i32
    %c0_i32_0 = arith.constant 0 : i32
    %c0_i32_1 = arith.constant 0 : i32
    return %arg0, %arg1, %c0_i32, %c0_i32_0 : i32, i32, i32, i32
  }
  func.func @transform_1(%arg0: i32, %arg1: i32) -> (i32, i32, i32, i32) {
    %c1_i32 = arith.constant 1 : i32
    %0 = arith.addi %arg1, %c1_i32 : i32
    %c2_i32 = arith.constant 2 : i32
    %1 = arith.muli %0, %c2_i32 : i32
    %c0_i32 = arith.constant 0 : i32
    %c0_i32_0 = arith.constant 0 : i32
    %c0_i32_1 = arith.constant 0 : i32
    return %arg0, %1, %c0_i32, %c0_i32_0 : i32, i32, i32, i32
  }
  func.func @transform_2(%arg0: i32, %arg1: i32) -> (i32, i32) {
    %c0_i32 = arith.constant 0 : i32
    %c0_i32_0 = arith.constant 0 : i32
    %c0_i32_1 = arith.constant 0 : i32
    return %c0_i32, %c0_i32_0 : i32, i32
  }
  func.func @transform_3(%arg0: i32, %arg1: i32) -> (i32, i32) {
    %c0_i32 = arith.constant 0 : i32
    %c0_i32_0 = arith.constant 0 : i32
    %c0_i32_1 = arith.constant 0 : i32
    return %c0_i32, %c0_i32_0 : i32, i32
  }
  func.func @transform_4(%arg0: i32, %arg1: i32) -> (i32, i32, i32, i32) {
    %c0_i32 = arith.constant 0 : i32
    %c0_i32_0 = arith.constant 0 : i32
    %c0_i32_1 = arith.constant 0 : i32
    return %arg0, %arg1, %c0_i32, %c0_i32_0 : i32, i32, i32, i32
  }
}

</mosaic_0001>

<bundles_post_ra>
// kernel: tpu_custom_call.1
= control target key start
LH: loop header
LB: loop body
LE: loop exit
PB: predicated region body
PF: predicated region fallthrough
CT: control target
= control target key end

     0   :  { %9 = vsyncpa [#allocation3], 0  ;;  %s1450_s0 = inlined_call_operand.vmem [shape: f32[2,10,10,16], index: 0, kind: input, shape index: {}]   ;;  %s1451_s1 = inlined_call_operand.vmem [shape: f32[2,10,10,16], index: 1, kind: input, shape index: {}]   ;;  %s1452_s2 = inlined_call_operand.vmem [shape: f32[144,8], index: 2, kind: input, shape index: {}]   ;;  %s1453_s3 = inlined_call_operand.vmem [shape: f32[1,8], index: 3, kind: input, shape index: {}]   ;;  %s1454_s4 = inlined_call_operand.hbm [shape: f32[2,8,8,8], index: 4, kind: output, shape index: {}]  }
   0x1   :  { %11 = vsyncpa [#allocation3 + $0x1], 0  ;;  %s1123_s15 = smov 0   ;;  %s1125_s16 = smov 0  }
   0x2   :  { %s1127_s17 = smov 0   ;;  %s1129_s18 = smov 0  }
   0x3   :  { %s1131_s19 = smov 0   ;;  %s1133_s20 = smov 0  }
   0x4   :  { %s1135_s21 = smov 0   ;;  %s1137_s22 = smov 0  }
   0x5 LB: > { %s744_s23 = sadd.s32 4294967295, %s1085_s22   ;;  %s745_s24 = sadd.s32 4294967294, %s1085_s22   ;;  %s1085_s22 = sphi %s1137_s22, %s17_s22   ;;  %s1081_s21 = sphi %s1135_s21, %s1463_s21   ;;  %s1077_s20 = sphi %s1133_s20, %s1462_s20   ;;  %s1073_s19 = sphi %s1131_s19, %s1461_s19   ;;  %s1069_s18 = sphi %s1129_s18, %s1460_s18   ;;  %s1065_s17 = sphi %s1127_s17, %s1459_s17   ;;  %s1061_s16 = sphi %s1125_s16, %s1458_s16   ;;  %s1057_s15 = sphi %s1123_s15, %s1457_s15  }
   0x6   : > { %s26_s25 = sadd.s32 1, %s1077_s20  ;;  %s29_s26 = sadd.s32 1, %s1081_s21 }
   0x7   : > { %p27_p0 = scmp.ge.s32.totalorder %s26_s25, 2  ;;  %p150_p1 = scmp.ne.s32.totalorder %s1065_s17, %s1061_s16 }
   0x8   : > { %p151_p2 = scmp.eq.s32.totalorder %s744_s23, 3  ;;  %p156_p5 = scmp.ne.s32.totalorder %s1061_s16, %s1057_s15 }
   0x9   : > { %s1465_s25 = smov (%p27_p0, %s26_s25), 0  ;;  %s1467_s26 = smov (!%p27_p0, %s29_s26), %s1081_s21 }
   0xa   : > { %s136_s27 = ssub.s32 %s1077_s20, %s1465_s25  ;;  %p1174_p3 = por %p151_p2, %p150_p1 }
   0xb   : > { %p31_p4 = scmp.ge.s32.totalorder %s1467_s26, 2  ;;  %p157_p6 = scmp.eq.s32.totalorder %s745_s24, 3 }
   0xc   : > { %p750_p7 = scmp.ge.s32.totalorder %s1085_s22, 1  ;;  %p223_p9 = scmp.lt.s32.totalorder %s1085_s22, 5 }
   0xd   : > { %s1469_s26 = smov (%p31_p4, %s1467_s26), 0  ;;  %p1183_p8 = por %p157_p6, %p156_p5 }
   0xe   : > { %s135_s30 = ssub.s32 %s1081_s21, %s1469_s26  ;;  %s140_s5 = sadd.s32 1, %s1065_s17 }
   0xf   : > { %s137_s6 = sor.u32 %s136_s27, %s135_s30  ;;  %p224_p10 = pnand %p750_p7, %p223_p9 }
  0x10   : > { %p138_p11 = scmp.eq.s32.totalorder %s137_s6, 0  ;;  %s1195_s8 = sshll.u32 (!%p224_p10), %s1069_s18, 2  ;;  %v488_v0 = vld [vmem:[%s1452_s2] sm:$0xff] (!%p224_p10)  ;;  %v489_v1 = vld [vmem:[%s1452_s2 + $0x8] sm:$0xff] (!%p224_p10)  ;;  %v490_v2 = vld [vmem:[%s1452_s2 + $0x10] sm:$0xff] (!%p224_p10)  ;;  %v1087_v3 = vmov (!%p224_p10), 0.0|0.0  }
  0x11   : > { %227 = sbr.rel (%p224_p10) target bundleno = 411 (0x19b), region = 36  ;;  %p277_p12 = scmp.lt.s32.totalorder (!%p224_p10), %s1073_s19, 1  ;;  %794 = vmatprep.subr.bf16.mxu0 (!%p224_p10), %v1087_v3  ;;  %821 = vmatprep.subr.bf16.mxu1 (!%p224_p10), %v1087_v3  ;;  %v795_v4 = vpack.c.bf16 (!%p224_p10), %v489_v1, %v488_v0  ;;  %v491_v5 = vld [vmem:[%s1452_s2 + $0x18] sm:$0xff] (!%p224_p10)  ;;  %v492_v7 = vld [vmem:[%s1452_s2 + $0x20] sm:$0xff] (!%p224_p10)  ;;  %v493_v8 = vld [vmem:[%s1452_s2 + $0x28] sm:$0xff] (!%p224_p10)  ;;  %vm453_vm0 = vcmask (!%p224_p10), 130048  }
  0x12   : > { %s1192_s7 = scalar_select %p138_p11, %s1065_s17, %s140_s5  }
  0x13   : > { %p279_p13 = scmp.lt.s32.totalorder (!%p224_p10), %s1195_s8, 9  ;;  %796 = vmatpush1.bf16.msra.mxu0 (!%p224_p10), %v795_v4  ;;  %830 = vmatpush1.bf16.msra.mxu1 (!%p224_p10), %v795_v4  ;;  %v798_v6 = vpack.c.bf16 (!%p224_p10), %v491_v5, %v490_v2  ;;  %v801_v9 = vpack.c.bf16 (!%p224_p10), %v493_v8, %v492_v7  ;;  %v494_v10 = vld [vmem:[%s1452_s2 + $0x30] sm:$0xff] (!%p224_p10)  ;;  %v495_v11 = vld [vmem:[%s1452_s2 + $0x38] sm:$0xff] (!%p224_p10)  ;;  %v496_v24 = vld [vmem:[%s1452_s2 + $0x40] sm:$0xff] (!%p224_p10)  ;;  %s1089_s5 = smov (!%p224_p10), 16   ;;  %vm458_vm1 = vcmask (!%p224_p10), 261120  }
  0x14   : > { %797 = vmatprep.subr.bf16.mxu0 (!%p224_p10), %v1087_v3  ;;  %822 = vmatprep.subr.bf16.mxu1 (!%p224_p10), %v1087_v3  ;;  %v804_v22 = vpack.c.bf16 (!%p224_p10), %v495_v11, %v494_v10  ;;  %v497_v25 = vld [vmem:[%s1452_s2 + $0x48] sm:$0xff] (!%p224_p10)  ;;  %v498_v31 = vld [vmem:[%s1452_s2 + $0x50] sm:$0xff] (!%p224_p10)  ;;  %v499_v32 = vld [vmem:[%s1452_s2 + $0x58] sm:$0xff] (!%p224_p10)  ;;  %s1093_s18 = smov (!%p224_p10), 96   ;;  %vm463_vm2 = vcmask (!%p224_p10), 392192   ;;  %vm468_vm3 = vcmask (!%p224_p10), 523264  }
  0x15   : > { %v807_v29 = vpack.c.bf16 (!%p224_p10), %v497_v25, %v496_v24  ;;  %v810_v36 = vpack.c.bf16 (!%p224_p10), %v499_v32, %v498_v31  ;;  %v500_v38 = vld [vmem:[%s1452_s2 + $0x60] sm:$0xff] (!%p224_p10)  ;;  %v501_v39 = vld [vmem:[%s1452_s2 + $0x68] sm:$0xff] (!%p224_p10)  ;;  %v502_v43 = vld [vmem:[%s1452_s2 + $0x70] sm:$0xff] (!%p224_p10)  ;;  %vm473_vm4 = vcmask (!%p224_p10), 654336   ;;  %vm478_vm5 = vcmask (!%p224_p10), 785408  }
  0x16   : > { %v813_v41 = vpack.c.bf16 (!%p224_p10), %v501_v39, %v500_v38  ;;  %v503_v44 = vld [vmem:[%s1452_s2 + $0x78] sm:$0xff] (!%p224_p10)  ;;  %v504_v47 = vld [vmem:[%s1452_s2 + $0x80] sm:$0xff] (!%p224_p10)  ;;  %v505_v48 = vld [vmem:[%s1452_s2 + $0x88] sm:$0xff] (!%p224_p10)  ;;  %vm483_vm6 = vcmask (!%p224_p10), 916480   ;;  %vm617_vm7 = vcmask (!%p224_p10), 64512  }
  0x17   : > { %799 = vmatpush1.bf16.msra.mxu0 (!%p224_p10), %v798_v6  ;;  %831 = vmatpush1.bf16.msra.mxu1 (!%p224_p10), %v798_v6  ;;  %v816_v45 = vpack.c.bf16 (!%p224_p10), %v503_v44, %v502_v43  ;;  %v819_v51 = vpack.c.bf16 (!%p224_p10), %v505_v48, %v504_v47 }
  0x18   : > { %s1214_s24 = scalar_select %p277_p12, %s1073_s19, 1  ;;  %800 = vmatprep.subr.bf16.mxu0 %v1087_v3  ;;  %823 = vmatprep.subr.bf16.mxu1 %v1087_v3 }
  0x19   : > { %s280_s27 = scalar_select %p279_p13, %s1195_s8, 9 }
  0x1a   : > { %s839_s30 = smul.u32 20, %s1214_s24 }
  0x1b   : > { %s753_s11 = sshll.u32 %s280_s27, 1  ;;  %s793_s27 = sadd.s32 4, %s1195_s8  ;;  %802 = vmatpush1.bf16.msra.mxu0 %v801_v9  ;;  %832 = vmatpush1.bf16.msra.mxu1 %v801_v9 }
  0x1c   : > { %s283_s12 = sadd.s32 %s839_s30, %s753_s11  ;;  %p297_p0 = scmp.lt.s32.totalorder %s793_s27, 9  ;;  %803 = vmatprep.subr.bf16.mxu0 %v1087_v3  ;;  %824 = vmatprep.subr.bf16.mxu1 %v1087_v3 }
  0x1d   : > { %s754_s13 = sshll.u32 %s283_s12, 3  ;;  %s1088_s11 = smov 48  }
  0x1e   : > { %s1231_s23 = scalar_lea.vmem %s1450_s0, %s754_s13  ;;  %s1471_s27 = smov (!%p297_p0, %s793_s27), 9 }
  0x1f   : > { %v1243_v12 = vld [vmem:[%s1231_s23 + $0x10] sm:$0xff]  ;;  %v312_v14 = vld [vmem:[%s1231_s23 + $0x1] sm:$0xff]  ;;  %s757_s6 = sshll.u32 %s1471_s27, 1  ;;  %805 = vmatpush1.bf16.msra.mxu0 %v804_v22  ;;  %833 = vmatpush1.bf16.msra.mxu1 %v804_v22  ;;  %s1090_s12 = smov 64  }
  0x20   : > { %v1246_v13 = vld [vmem:[%s1231_s23 + $0x30] sm:$0xff]  ;;  %v314_v16 = vld [vmem:[%s1231_s23 + $0x21] sm:$0xff]  ;;  %s301_s9 = sadd.s32 %s839_s30, %s757_s6  ;;  %806 = vmatprep.subr.bf16.mxu0 %v1087_v3  ;;  %825 = vmatprep.subr.bf16.mxu1 %v1087_v3  ;;  %s1095_s27 = smov [#allocation2]  }
  0x21   : > { %v931_v15 = vpack.i.bf16 %v1246_v13, %v1243_v12  ;;  %v762_v17 = vld [vmem:[%s1231_s23 + $0x11] sm:$0xff]  ;;  %v921_v19 = vpack.i.bf16 %v314_v16, %v312_v14  ;;  %v316_v20 = vld [vmem:[%s1231_s23 + $0x2] sm:$0xff]  ;;  %s758_s10 = sshll.u32 %s301_s9, 3  ;;  %s1091_s9 = smov 32  }
  0x22   : > { %v1254_v18 = vld [vmem:[%s1231_s23 + $0x31] sm:$0xff]  ;;  %v1258_v21 = vld [vmem:[%s1231_s23 + $0x22] sm:$0xff]  ;;  %s1285_s14 = scalar_lea.vmem %s1451_s1, %s758_s10  ;;  %s1092_s10 = smov 80  }
  0x23   : > { %932 = vrot.lane.b32.xlu1 %v931_v15, %s1088_s11  ;;  %v936_v23 = vpack.i.bf16 %v1254_v18, %v762_v17  ;;  %922 = vrot.lane.b32.xlu0 %v921_v19, %s1089_s5  ;;  %v926_v26 = vpack.i.bf16 %v1258_v21, %v316_v20  ;;  %v765_v27 = vld [vmem:[%s1231_s23 + $0x12] sm:$0xff]  ;;  %v324_v33 = vld [vmem:[%s1285_s14] sm:$0xff] }
  0x24   : > { %v1273_v28 = vld [vmem:[%s1231_s23 + $0x32] sm:$0xff]  ;;  %775 = vmatprep.mubr.msk.f32.mxu0 %vm453_vm0, %v1258_v21  ;;  %v1296_v34 = vld [vmem:[%s1231_s23 + $0x20] sm:$0xff]  ;;  %808 = vmatpush1.bf16.msra.mxu0 %v807_v29 }
  0x25   : > { %v946_v30 = vpack.i.bf16 %v1273_v28, %v765_v27  ;;  %v332_v35 = vld [vmem:[%s1285_s14 + $0x2] sm:$0xff]  ;;  %834 = vmatpush1.bf16.msra.mxu1 %v807_v29  ;;  %v956_v37 = vpack.i.bf16 %v324_v33, %v1296_v34  ;;  %809 = vmatprep.subr.bf16.mxu0 %v1087_v3  ;;  %v339_v49 = vld [vmem:[%s1285_s14 + $0x11] sm:$0xff] }
  0x26   : > { %777 = vmatprep.mubr.msk.f32.mxu1 %vm453_vm0, %v332_v35  ;;  %v328_v40 = vld [vmem:[%s1285_s14 + $0x1] sm:$0xff]  ;;  %826 = vmatprep.subr.bf16.mxu1 %v1087_v3  ;;  %v976_v46 = vpack.i.bf16 %v332_v35, %v1258_v21  ;;  %v336_v50 = vld [vmem:[%s1285_s14 + $0x10] sm:$0xff]  ;;  %v986_v52 = vpack.i.bf16 %v339_v49, %v1254_v18 }
  0x27   : > { %937 = vrot.lane.b32.xlu1 %v936_v23, %s1090_s12  ;;  %927 = vrot.lane.b32.xlu0 %v926_v26, %s1091_s9  ;;  %v966_v42 = vpack.i.bf16 %v328_v40, %v314_v16  ;;  %v981_v53 = vpack.i.bf16 %v336_v50, %v1246_v13  ;;  %v308_v58 = vld [vmem:[%s1231_s23] sm:$0xff]  ;;  %s268_s23 = sand.u32 1, %s1061_s16  }
  0x28   : > { %811 = vmatpush1.bf16.msra.mxu0 %v810_v36 }
  0x29   : > { %835 = vmatpush1.bf16.msra.mxu1 %v810_v36  ;;  %812 = vmatprep.subr.bf16.mxu0 %v1087_v3 }
  0x2a   : > { %827 = vmatprep.subr.bf16.mxu1 %v1087_v3 }
  0x2b   : > { %947 = vrot.lane.b32.xlu1 %v946_v30, %s1092_s10  ;;  %942 = vrot.lane.b32.xlu0 %v936_v23, %s1089_s5  ;;  %s1094_s5 = smov 112  }
  0x2c   : > { %814 = vmatpush1.bf16.msra.mxu0 %v813_v41 }
  0x2d   : > { %836 = vmatpush1.bf16.msra.mxu1 %v813_v41  ;;  %815 = vmatprep.subr.bf16.mxu0 %v1087_v3 }
  0x2e   : > { %828 = vmatprep.subr.bf16.mxu1 %v1087_v3 }
  0x2f   : > { %957 = vrot.lane.b32.xlu1 %v956_v37, %s1093_s18  ;;  %952 = vrot.lane.b32.xlu0 %v946_v30, %s1091_s9  ;;  %s781_s9 = sshll.u32 %s1073_s19, 3 }
  0x30   : > { %817 = vmatpush1.bf16.msra.mxu0 %v816_v45 }
  0x31   : > { %837 = vmatpush1.bf16.msra.mxu1 %v816_v45  ;;  %818 = vmatprep.subr.bf16.mxu0 %v1087_v3 }
  0x32   : > { %829 = vmatprep.subr.bf16.mxu1 %v1087_v3 }
  0x33   : > { %967 = vrot.lane.b32.xlu1 %v966_v42, %s1094_s5  ;;  %962 = vrot.lane.b32.xlu0 %v956_v37, %s1088_s11  ;;  %s995_s11 = sshll.u32 %s1095_s27, 4  ;;  %s996_s11 = int_to_ptr.vmem [resolvable:$false] %s995_s11 }
  0x34   : > { %820 = vmatpush1.bf16.msra.mxu0 %v819_v51 }
  0x35   : > { %838 = vmatpush1.bf16.msra.mxu1 %v819_v51 }
  0x37   : > { %977 = vrot.lane.b32.xlu1 %v976_v46, %s1092_s10  ;;  %972 = vrot.lane.b32.xlu0 %v966_v42, %s1090_s12  ;;  %s997_s12 = scalar_lea.vmem %s996_s11, 1024 }
  0x3b   : > { %987 = vrot.lane.b32.xlu1 %v986_v52, %s1094_s5  ;;  %982 = vrot.lane.b32.xlu0 %v981_v53, %s1093_s18  ;;  %s635_s18 = sadd.s32 %s781_s9, %s1195_s8  ;;  %s1398_s8 = scalar_lea.sflag [#allocation3], %s268_s23 }
  0x3c   : > { %s782_s5 = sshll.u32 %s635_s18, 7 }
  0x3d   : > { %s1390_s6 = scalar_lea.hbm %s1454_s4, %s782_s5 }
  0x95   : > { %v933_v54 = vpop.permute.xlu1 %932  ;;  %v923_v55 = vpop.permute.xlu0 %922 }
  0x96   : > { %v925_v56 = vunpack.i.h.bf16 %v923_v55  ;;  %v924_v57 = vunpack.i.l.bf16 %v923_v55  ;;  %v935_v4 = vunpack.i.h.bf16 %v933_v54  ;;  %v934_v5 = vunpack.i.l.bf16 %v933_v54 }
  0x98   : > { %v454_v63 = vsel %vm453_vm0, %v308_v58, %v924_v57  ;;  %v456_v0 = vsel %vm453_vm0, %v1296_v34, %v925_v56  ;;  %v342_v34 = vld [vmem:[%s1285_s14 + $0x12] sm:$0xff]  ;;  %s751_s14 = sshll.u32 %s268_s23, 5 }
  0x99   : > { %v938_v59 = vpop.permute.xlu1 %937  ;;  %v928_v60 = vpop.permute.xlu0 %927  ;;  %s270_s10 = scalar_lea.vmem [#allocation2], %s751_s14 }
  0x9a   : > { %v930_v61 = vunpack.i.h.bf16 %v928_v60  ;;  %v929_v62 = vunpack.i.l.bf16 %v928_v60  ;;  %v940_v7 = vunpack.i.h.bf16 %v938_v59  ;;  %v939_v8 = vunpack.i.l.bf16 %v938_v59  ;;  %s638_s24 = sshll.u32 %s270_s10, 4  ;;  %s1392_s24 = int_to_ptr.vmem [resolvable:$true] %s638_s24 }
  0x9b   : > { %s991_s13 = scalar_lea.vmem %s1392_s24, 512  ;;  %p998_p5 = scmp.lt.s32.totalorder %s1392_s24, %s996_s11 }
  0x9c   : > { %v459_v1 = vsel %vm458_vm1, %v454_v63, %v929_v62  ;;  %v461_v2 = vsel %vm458_vm1, %v456_v0, %v930_v61  ;;  %v774_v62 = vld [vmem:[%s1453_s3] ss:$0 sm:$0xff]  ;;  %p992_p1 = scmp.ne.s32.totalorder %s1392_s24, %s991_s13  ;;  %p999_p6 = scmp.lt.s32.totalorder %s997_s12, %s991_s13 }
  0x9d   : > { %v948_v3 = vpop.permute.xlu1 %947  ;;  %v943_v6 = vpop.permute.xlu0 %942  ;;  %v464_v9 = vsel %vm463_vm2, %v459_v1, %v934_v5  ;;  %v466_v10 = vsel %vm463_vm2, %v461_v2, %v935_v4 }
  0x9e   : > { %v950_v14 = vunpack.i.h.bf16 %v948_v3  ;;  %v949_v15 = vunpack.i.l.bf16 %v948_v3  ;;  %v469_v19 = vsel %vm468_vm3, %v464_v9, %v939_v8  ;;  %v471_v20 = vsel %vm468_vm3, %v466_v10, %v940_v7  ;;  %p993_p2 = pnand %p992_p1, %p1174_p3  ;;  %p1000_p7 = por %p999_p6, %p998_p5 }
  0x9f   : > { %v945_v21 = vunpack.i.h.bf16 %v943_v6  ;;  %v944_v22 = vunpack.i.l.bf16 %v943_v6 }
  0xa0   : > { %v474_v27 = vsel %vm473_vm4, %v469_v19, %v949_v15  ;;  %v476_v29 = vsel %vm473_vm4, %v471_v20, %v950_v14  ;;  %p994_p4 = pneg %p993_p2 }
  0xa1   : > { %v958_v11 = vpop.permute.xlu1 %957  ;;  %v953_v16 = vpop.permute.xlu0 %952  ;;  %v455_v40 = vsel %vm453_vm0, %v1243_v12, %v944_v22  ;;  %v457_v41 = vsel %vm453_vm0, %v1246_v13, %v945_v21 }
  0xa2   : > { %v960_v17 = vunpack.i.h.bf16 %v958_v11  ;;  %v959_v18 = vunpack.i.l.bf16 %v958_v11  ;;  %v955_v30 = vunpack.i.h.bf16 %v953_v16  ;;  %v954_v31 = vunpack.i.l.bf16 %v953_v16  ;;  %p1001_p9 = pnand %p1000_p7, %p994_p4 }
  0xa4   : > { %v479_v32 = vsel %vm478_vm5, %v474_v27, %v959_v18  ;;  %v481_v33 = vsel %vm478_vm5, %v476_v29, %v960_v17  ;;  %v460_v43 = vsel %vm458_vm1, %v455_v40, %v954_v31  ;;  %v462_v44 = vsel %vm458_vm1, %v457_v41, %v955_v30 }
  0xa5   : > { %v968_v23 = vpop.permute.xlu1 %967  ;;  %v963_v26 = vpop.permute.xlu0 %962 }
  0xa6   : > { %v970_v24 = vunpack.i.h.bf16 %v968_v23  ;;  %v969_v25 = vunpack.i.l.bf16 %v968_v23  ;;  %v965_v35 = vunpack.i.h.bf16 %v963_v26  ;;  %v964_v36 = vunpack.i.l.bf16 %v963_v26 }
  0xa8   : > { %v484_v37 = vsel %vm483_vm6, %v479_v32, %v969_v25  ;;  %v486_v38 = vsel %vm483_vm6, %v481_v33, %v970_v24  ;;  %v465_v47 = vsel %vm463_vm2, %v460_v43, %v964_v36  ;;  %v467_v48 = vsel %vm463_vm2, %v462_v44, %v965_v35 }
  0xa9   : > { %589 = vmatmul.mubr.f32.vlgmr.msra.gmra.mrb[0].mxu0 %v484_v37  ;;  %599 = vmatmul.mubr.f32.vlgmr.msra.gmra.mrb[0].mxu1 %v486_v38  ;;  %v978_v39 = vpop.permute.xlu1 %977  ;;  %v973_v42 = vpop.permute.xlu0 %972 }
  0xaa   : > { %776 = vmatprep.mubr.msk.f32.mxu0 %vm453_vm0, %v1273_v28  ;;  %778 = vmatprep.mubr.msk.f32.mxu1 %vm453_vm0, %v342_v34  ;;  %v975_v45 = vunpack.i.h.bf16 %v973_v42  ;;  %v974_v46 = vunpack.i.l.bf16 %v973_v42  ;;  %v980_v12 = vunpack.i.h.bf16 %v978_v39  ;;  %v979_v49 = vunpack.i.l.bf16 %v978_v39 }
  0xac   : > { %v470_v13 = vsel %vm468_vm3, %v465_v47, %v974_v46  ;;  %v472_v50 = vsel %vm468_vm3, %v467_v48, %v975_v45 }
  0xad   : > { %v988_v28 = vpop.permute.xlu1 %987  ;;  %v983_v51 = vpop.permute.xlu0 %982  ;;  %v475_v56 = vsel %vm473_vm4, %v470_v13, %v979_v49  ;;  %v477_v57 = vsel %vm473_vm4, %v472_v50, %v980_v12 }
  0xae   : > { %v990_v52 = vunpack.i.h.bf16 %v988_v28  ;;  %v989_v53 = vunpack.i.l.bf16 %v988_v28  ;;  %v985_v54 = vunpack.i.h.bf16 %v983_v51  ;;  %v984_v55 = vunpack.i.l.bf16 %v983_v51 }
  0xb0   : > { %v480_v58 = vsel %vm478_vm5, %v475_v56, %v984_v55  ;;  %v482_v59 = vsel %vm478_vm5, %v477_v57, %v985_v54 }
  0xb1   : > { %v485_v60 = vsel %vm483_vm6, %v480_v58, %v989_v53  ;;  %v487_v61 = vsel %vm483_vm6, %v482_v59, %v990_v52 }
  0xb2   : > { %594 = vmatmul.mubr.f32.gmra.mrb[2].mxu0 %v485_v60  ;;  %604 = vmatmul.mubr.f32.gmra.mrb[2].mxu1 %v487_v61 }
 0x17c   : > { %v590_v63 = vpop.f32.mrb[0].mxu0  ;;  %v600_v0 = vpop.f32.mrb[0].mxu1 }
 0x17d   : > { %v591_v1 = vadd.f32 %v774_v62, %v590_v63  ;;  %v601_v2 = vadd.f32 %v774_v62, %v600_v0  ;;  %v592_v3 = vpop.f32.mrb[1].mxu0  ;;  %v602_v4 = vpop.f32.mrb[1].mxu1 }
 0x17f   : > { %v609_v5 = vmul.f32 0.1, %v591_v1  ;;  %v611_v6 = vmul.f32 0.1, %v601_v2 }
 0x181   : > { %v613_v7 = vmax.f32 %v591_v1, %v609_v5  ;;  %v615_v8 = vmax.f32 %v601_v2, %v611_v6 }
 0x183   : > { %618 = vst.msk [vmem:[%s270_s10] sm:$0xff] %vm617_vm7, %v613_v7  ;;  %620 = vst.msk [vmem:[%s270_s10 + $0x10] sm:$0xff] %vm617_vm7, %v615_v8 }
 0x185   : > { %v595_v9 = vpop.f32.mrb[2].mxu0  ;;  %v605_v10 = vpop.f32.mrb[2].mxu1 }
 0x186   : > { %v596_v11 = vadd.f32 %v774_v62, %v595_v9  ;;  %v606_v14 = vadd.f32 %v774_v62, %v605_v10  ;;  %v597_v15 = vpop.f32.mrb[3].mxu0  ;;  %v607_v16 = vpop.f32.mrb[3].mxu1 }
 0x188   : > { %v610_v17 = vmul.f32 0.1, %v596_v11  ;;  %v612_v18 = vmul.f32 0.1, %v606_v14 }
 0x18a   : > { %v614_v19 = vmax.f32 %v596_v11, %v610_v17  ;;  %v616_v20 = vmax.f32 %v606_v14, %v612_v18 }
 0x18c   : > { %619 = vst.msk [vmem:[%s270_s10 + $0x8] sm:$0xff] %vm617_vm7, %v614_v19  ;;  %621 = vst.msk [vmem:[%s270_s10 + $0x18] sm:$0xff] %vm617_vm7, %v616_v20 }
 0x18d   : > { %1004 = shalt.err (!%p1001_p9)
}
 0x18e   : > { %s1005_s23 = scalar_lea.hbm %s1390_s6, 512  ;;  %s1009_s10 = scalar_lea.hbm %s1454_s4, 2048 }
 0x18f   : > { %p1006_p10 = scmp.ne.s32.totalorder %s1390_s6, %s1005_s23  ;;  %p1010_p13 = scmp.lt.u32.totalorder %s1390_s6, %s1454_s4 }
 0x190   : > { %p1011_p0 = scmp.lt.u32.totalorder %s1009_s10, %s1005_s23  ;;  %p1013_p2 = scmp.lt.u32.totalorder %s1005_s23, %s1390_s6 }
 0x191   : > { %p1007_p11 = pnand %p1006_p10, %p1174_p3 }
 0x192   : > { %p1012_p1 = por %p1011_p0, %p1010_p13 }
 0x193   : > { %p1008_p12 = pneg %p1007_p11 }
 0x194   : > { %p1014_p4 = por %p1013_p2, %p1012_p1 }
 0x196   : > { %p1015_p5 = pnand %p1014_p4, %p1008_p12 }
 0x198   : > { %1018 = shalt.err (!%p1015_p5)
}
 0x199   : > { %s1096_s30 = smov 128   ;;  %s1097_s19 = smov 8  }
 0x19a   : > { %840 = dma.vmem_to_hbm [thread:$0]  (%p1174_p3), %s1392_s24, 512, %s1390_s6, %s1398_s8, %s1096_s30, %s1096_s30, %s1097_s19  }
 0x19b PF: > { %p846_p6 = scmp.ge.s32.totalorder %s1085_s22, 2  ;;  %s653_s13 = sand.u32 1, %s1057_s15  }
 0x19c   : > { %s654_s27 = scalar_lea.sflag [#allocation3], %s653_s13 }
 0x19d   : > { %p843_p7 = pnand %p846_p6, %p1183_p8 }
 0x19f   : > { %1052 = dma.done.wait (!%p843_p7), %s654_s27, 512  }
 0x1a0   : > { %1054 = vsyncadd (!%p843_p7), %s654_s27, 4294966784  ;;  %s17_s22 = sadd.s32 1, %s1085_s22   ;;  %s1457_s15 = smov %s1061_s16 }
 0x1a1   : > { %p14_p9 = scmp.ge.s32.totalorder %s17_s22, 6   ;;  %s1458_s16 = smov %s1065_s17 }
 0x1a2   : > { %s1459_s17 = smov %s1192_s7  ;;  %s1460_s18 = smov %s1077_s20 }
 0x1a3   : > { %s1461_s19 = smov %s1081_s21  ;;  %s1462_s20 = smov %s1465_s25 }
 0x1a4   : > { %s1463_s21 = smov %s1469_s26  ;;  %16 = sbr.rel (!%p14_p9) target bundleno = 5 (0x5), region = 76 }
 0x1ab   :  { %659 = vsyncpa [#allocation3], 1 }
 0x1ac   :  { %661 = vsyncpa [#allocation3 + $0x1], 1 }

</bundles_post_ra>
